<compile_context>
chip_gen: v7x
topology: tpu7x:2x2x1
jax: 0.10.0
libtpu: 0.0.40
codegen_flags: <defaults>
</compile_context>

<pallas_src>
import functools
import math

import jax
import jax.numpy as jnp
from jax.experimental import pallas as pl
from jax.experimental.pallas import tpu as pltpu


# Tile budgets (multiples of (8,128)); dims smaller than a tile use one full-dim block.
_TM = 512
_TN = 512
_TK = 512
_TM_FFN = 256          # smaller M tile for the FFN kernel (dff-wide f32 intermediate)
_TM_LN = 1024
_TQ = 256              # attention query-block tile
_MAX_FUSED_LN_N = 2048  # max LN width handled by the fused matmul+add+LN epilogue
_VMEM_LIMIT = 48 * 1024 * 1024


def _round_up(x, m):
    return ((x + m - 1) // m) * m


def _dim_blocks(size, tile):
    """Return (block, padded_size, n_blocks). Full-dim single block if it fits."""
    if size <= tile:
        return size, size, 1
    padded = _round_up(size, tile)
    return tile, padded, padded // tile


def _as_bf16(x):
    return x if x.dtype == jnp.bfloat16 else x.astype(jnp.bfloat16)


# ----------------------------------------------------------------------------
# Kernel 1: tiled matmul (bf16 in, f32 accumulate, bf16 out)
# ----------------------------------------------------------------------------
def _matmul_kernel(x_ref, w_ref, b_ref, o_ref, acc_ref, *, relu):
    @pl.when(pl.program_id(2) == 0)
    def _():
        acc_ref[...] = jnp.zeros_like(acc_ref)

    acc_ref[...] += jnp.dot(x_ref[...], w_ref[...],
                            preferred_element_type=jnp.float32)

    @pl.when(pl.program_id(2) == pl.num_programs(2) - 1)
    def _():
        y = acc_ref[...] + b_ref[...]
        if relu:
            y = jnp.maximum(y, 0.0)
        o_ref[...] = y.astype(o_ref.dtype)


@functools.lru_cache(maxsize=None)
def _build_matmul(M, K, N, relu):
    tm, Mp, gm = _dim_blocks(M, _TM)
    tn, Np, gn = _dim_blocks(N, _TN)
    tk, Kp, gk = _dim_blocks(K, _TK)
    fn = pl.pallas_call(
        functools.partial(_matmul_kernel, relu=relu),
        out_shape=jax.ShapeDtypeStruct((Mp, Np), jnp.bfloat16),
        grid=(gm, gn, gk),
        in_specs=[
            pl.BlockSpec((tm, tk), lambda i, j, k: (i, k)),
            pl.BlockSpec((tk, tn), lambda i, j, k: (k, j)),
            pl.BlockSpec((1, tn), lambda i, j, k: (0, j)),
        ],
        out_specs=pl.BlockSpec((tm, tn), lambda i, j, k: (i, j)),
        scratch_shapes=[pltpu.VMEM((tm, tn), jnp.float32)],
        compiler_params=pltpu.CompilerParams(
            dimension_semantics=("parallel", "parallel", "arbitrary"),
            vmem_limit_bytes=_VMEM_LIMIT,
        ),
        cost_estimate=pl.CostEstimate(
            flops=2 * Mp * Kp * Np, transcendentals=0,
            bytes_accessed=2 * (Mp * Kp + Kp * Np + Mp * Np)),
    )
    return fn, (Mp, Kp, Np)


def pallas_linear(x, w, b, relu=False):
    """y = x @ w + b (optional ReLU). w is bf16, b f32; output bf16."""
    lead = x.shape[:-1]
    K = x.shape[-1]
    N = w.shape[1]
    x2 = _as_bf16(x).reshape(-1, K)
    M = x2.shape[0]
    fn, (Mp, Kp, Np) = _build_matmul(M, K, N, bool(relu))
    # Weights at ACT sizes are tile-aligned; pads only trigger on odd shapes.
    if (Mp, Kp) != (M, K):
        x2 = jnp.pad(x2, ((0, Mp - M), (0, Kp - K)))
    wp = w if (Kp, Np) == (K, N) else jnp.pad(w, ((0, Kp - K), (0, Np - N)))
    bp = b if Np == N else jnp.pad(b, (0, Np - N))
    y = fn(x2, wp, bp.reshape(1, Np).astype(jnp.float32))
    if (Mp, Np) != (M, N):
        y = y[:M, :N]
    return y.reshape(*lead, N)


# ----------------------------------------------------------------------------
# Kernel 2: tiled matmul with fused residual-add + LayerNorm epilogue
# ----------------------------------------------------------------------------
def _matmul_add_ln_kernel(x_ref, w_ref, b_ref, r_ref, g_ref, be_ref, o_ref, acc_ref):
    @pl.when(pl.program_id(1) == 0)
    def _():
        acc_ref[...] = jnp.zeros_like(acc_ref)

    acc_ref[...] += jnp.dot(x_ref[...], w_ref[...],
                            preferred_element_type=jnp.float32)

    @pl.when(pl.program_id(1) == pl.num_programs(1) - 1)
    def _():
        y = acc_ref[...] + b_ref[...] + r_ref[...].astype(jnp.float32)
        mean = jnp.mean(y, axis=-1, keepdims=True)
        yc = y - mean
        var = jnp.mean(yc * yc, axis=-1, keepdims=True)
        y = yc * jax.lax.rsqrt(var + 1e-5)
        o_ref[...] = (y * g_ref[...] + be_ref[...]).astype(o_ref.dtype)


@functools.lru_cache(maxsize=None)
def _build_matmul_add_ln(M, K, N):
    tm, Mp, gm = _dim_blocks(M, _TM)
    tk, Kp, gk = _dim_blocks(K, _TK)
    fn = pl.pallas_call(
        _matmul_add_ln_kernel,
        out_shape=jax.ShapeDtypeStruct((Mp, N), jnp.bfloat16),
        grid=(gm, gk),
        in_specs=[
            pl.BlockSpec((tm, tk), lambda i, k: (i, k)),
            pl.BlockSpec((tk, N), lambda i, k: (k, 0)),
            pl.BlockSpec((1, N), lambda i, k: (0, 0)),
            pl.BlockSpec((tm, N), lambda i, k: (i, 0)),
            pl.BlockSpec((1, N), lambda i, k: (0, 0)),
            pl.BlockSpec((1, N), lambda i, k: (0, 0)),
        ],
        out_specs=pl.BlockSpec((tm, N), lambda i, k: (i, 0)),
        scratch_shapes=[pltpu.VMEM((tm, N), jnp.float32)],
        compiler_params=pltpu.CompilerParams(
            dimension_semantics=("parallel", "arbitrary"),
            vmem_limit_bytes=_VMEM_LIMIT,
        ),
        cost_estimate=pl.CostEstimate(
            flops=2 * Mp * Kp * N, transcendentals=0,
            bytes_accessed=2 * (Mp * Kp + Kp * N + 2 * Mp * N)),
    )
    return fn, (Mp, Kp)


def pallas_linear_add_ln(x, w, b, residual, ln):
    """LayerNorm(residual + x @ w + b) -> bf16, LN fused into the matmul epilogue."""
    lead = x.shape[:-1]
    K = x.shape[-1]
    N = w.shape[1]
    if N > _MAX_FUSED_LN_N:                      # fallback (never hit at ACT sizes)
        return pallas_add_ln(pallas_linear(x, w, b), residual, ln)
    x2 = _as_bf16(x).reshape(-1, K)
    r2 = _as_bf16(residual).reshape(-1, N)
    M = x2.shape[0]
    fn, (Mp, Kp) = _build_matmul_add_ln(M, K, N)
    if (Mp, Kp) != (M, K):
        x2 = jnp.pad(x2, ((0, Mp - M), (0, Kp - K)))
    if Mp != M:
        r2 = jnp.pad(r2, ((0, Mp - M), (0, 0)))
    wp = w if Kp == K else jnp.pad(w, ((0, Kp - K), (0, 0)))
    y = fn(x2, wp, b.reshape(1, N).astype(jnp.float32), r2,
           ln["g"].reshape(1, N).astype(jnp.float32),
           ln["b"].reshape(1, N).astype(jnp.float32))
    if Mp != M:
        y = y[:M]
    return y.reshape(*lead, N)


# ----------------------------------------------------------------------------
# Kernel 3: fused FFN (lin1 + ReLU + lin2) + residual + LayerNorm
# ----------------------------------------------------------------------------
def _ffn_add_ln_kernel(x_ref, w1_ref, b1_ref, w2_ref, b2_ref, g_ref, be_ref, o_ref):
    x = x_ref[...]
    h = jnp.dot(x, w1_ref[...], preferred_element_type=jnp.float32) + b1_ref[...]
    h = jnp.maximum(h, 0.0).astype(jnp.bfloat16)
    y = jnp.dot(h, w2_ref[...], preferred_element_type=jnp.float32) + b2_ref[...]
    y = y + x.astype(jnp.float32)                       # residual is x itself
    mean = jnp.mean(y, axis=-1, keepdims=True)
    yc = y - mean
    var = jnp.mean(yc * yc, axis=-1, keepdims=True)
    y = yc * jax.lax.rsqrt(var + 1e-5)
    o_ref[...] = (y * g_ref[...] + be_ref[...]).astype(o_ref.dtype)


@functools.lru_cache(maxsize=None)
def _build_ffn_add_ln(M, D, F):
    tm, Mp, gm = _dim_blocks(M, _TM_FFN)
    fn = pl.pallas_call(
        _ffn_add_ln_kernel,
        out_shape=jax.ShapeDtypeStruct((Mp, D), jnp.bfloat16),
        grid=(gm,),
        in_specs=[
            pl.BlockSpec((tm, D), lambda i: (i, 0)),
            pl.BlockSpec((D, F), lambda i: (0, 0)),     # invariant bf16 weights
            pl.BlockSpec((1, F), lambda i: (0, 0)),
            pl.BlockSpec((F, D), lambda i: (0, 0)),
            pl.BlockSpec((1, D), lambda i: (0, 0)),
            pl.BlockSpec((1, D), lambda i: (0, 0)),
            pl.BlockSpec((1, D), lambda i: (0, 0)),
        ],
        out_specs=pl.BlockSpec((tm, D), lambda i: (i, 0)),
        compiler_params=pltpu.CompilerParams(
            dimension_semantics=("parallel",),
            vmem_limit_bytes=_VMEM_LIMIT,
        ),
        cost_estimate=pl.CostEstimate(
            flops=4 * Mp * D * F, transcendentals=0,
            bytes_accessed=2 * (2 * Mp * D + 2 * D * F)),
    )
    return fn, Mp


def pallas_ffn_add_ln(x, p, ln):
    """LayerNorm(x + W2 relu(W1 x + b1) + b2) -> bf16."""
    lead = x.shape[:-1]
    D = x.shape[-1]
    F = p["w1"].shape[1]
    x2 = _as_bf16(x).reshape(-1, D)
    M = x2.shape[0]
    fn, Mp = _build_ffn_add_ln(M, D, F)
    if Mp != M:
        x2 = jnp.pad(x2, ((0, Mp - M), (0, 0)))
    y = fn(x2, p["w1"], p["b1"].reshape(1, F), p["w2"], p["b2"].reshape(1, D),
           ln["g"].reshape(1, D), ln["b"].reshape(1, D))
    if Mp != M:
        y = y[:M]
    return y.reshape(*lead, D)


# ----------------------------------------------------------------------------
# Kernel 4: standalone residual-add + LayerNorm (fallback only)
# ----------------------------------------------------------------------------
def _add_ln_kernel(a_ref, r_ref, g_ref, b_ref, o_ref):
    x = a_ref[...].astype(jnp.float32) + r_ref[...].astype(jnp.float32)
    mean = jnp.mean(x, axis=-1, keepdims=True)
    xc = x - mean
    var = jnp.mean(xc * xc, axis=-1, keepdims=True)
    o_ref[...] = ((xc * jax.lax.rsqrt(var + 1e-5)) * g_ref[...] + b_ref[...]
                  ).astype(o_ref.dtype)


@functools.lru_cache(maxsize=None)
def _build_add_ln(M, D):
    tm, Mp, gm = _dim_blocks(M, _TM_LN)
    fn = pl.pallas_call(
        _add_ln_kernel,
        out_shape=jax.ShapeDtypeStruct((Mp, D), jnp.bfloat16),
        grid=(gm,),
        in_specs=[pl.BlockSpec((tm, D), lambda i: (i, 0)),
                  pl.BlockSpec((tm, D), lambda i: (i, 0)),
                  pl.BlockSpec((1, D), lambda i: (0, 0)),
                  pl.BlockSpec((1, D), lambda i: (0, 0))],
        out_specs=pl.BlockSpec((tm, D), lambda i: (i, 0)),
        compiler_params=pltpu.CompilerParams(
            dimension_semantics=("parallel",), vmem_limit_bytes=_VMEM_LIMIT),
    )
    return fn, Mp


def pallas_add_ln(x, res, ln):
    lead = x.shape[:-1]
    D = x.shape[-1]
    x2 = _as_bf16(x).reshape(-1, D)
    r2 = _as_bf16(res).reshape(-1, D)
    M = x2.shape[0]
    fn, Mp = _build_add_ln(M, D)
    if Mp != M:
        x2 = jnp.pad(x2, ((0, Mp - M), (0, 0)))
        r2 = jnp.pad(r2, ((0, Mp - M), (0, 0)))
    y = fn(x2, r2, ln["g"].reshape(1, D).astype(jnp.float32),
           ln["b"].reshape(1, D).astype(jnp.float32))
    if Mp != M:
        y = y[:M]
    return y.reshape(*lead, D)


# ----------------------------------------------------------------------------
# Kernel 5: attention, head-major layout, grid = (B*H, query blocks)
# ----------------------------------------------------------------------------
def _attention_kernel(q_ref, k_ref, v_ref, o_ref, *, scale):
    q = q_ref[0]                                   # (tq, dh) bf16
    k = k_ref[0]                                   # (Sk, dh) bf16
    v = v_ref[0]                                   # (Sk, dh) bf16
    s = jax.lax.dot_general(q, k, (((1,), (1,)), ((), ())),
                            preferred_element_type=jnp.float32) * scale
    s = s - jnp.max(s, axis=-1, keepdims=True)
    p = jnp.exp(s)
    p = p * pl.reciprocal(jnp.sum(p, axis=-1, keepdims=True), approx=True)
    o_ref[0] = jnp.dot(p.astype(jnp.bfloat16), v,
                       preferred_element_type=jnp.float32).astype(o_ref.dtype)


@functools.lru_cache(maxsize=None)
def _build_attention(BH, Sqp, Sk, dh, tq):
    scale = 1.0 / math.sqrt(dh)
    gq = Sqp // tq
    return pl.pallas_call(
        functools.partial(_attention_kernel, scale=scale),
        out_shape=jax.ShapeDtypeStruct((BH, Sqp, dh), jnp.bfloat16),
        grid=(BH, gq),
        in_specs=[
            pl.BlockSpec((1, tq, dh), lambda b, i: (b, i, 0)),
            pl.BlockSpec((1, Sk, dh), lambda b, i: (b, 0, 0)),
            pl.BlockSpec((1, Sk, dh), lambda b, i: (b, 0, 0)),
        ],
        out_specs=pl.BlockSpec((1, tq, dh), lambda b, i: (b, i, 0)),
        compiler_params=pltpu.CompilerParams(
            dimension_semantics=("parallel", "parallel"),
            vmem_limit_bytes=_VMEM_LIMIT,
        ),
    )


def pallas_attention(q, k, v):
    """q,k,v: head-major (B*H, S, dh) bf16 -> (B*H, Sq, dh) bf16."""
    BH, Sq, dh = q.shape
    Sk = k.shape[1]
    if Sq <= _TQ:
        tq, Sqp = Sq, Sq
    else:
        tq = _TQ
        Sqp = _round_up(Sq, tq)
    fn = _build_attention(BH, Sqp, Sk, dh, tq)
    if Sqp != Sq:
        q = jnp.pad(q, ((0, 0), (0, Sqp - Sq), (0, 0)))
    o = fn(q, k, v)
    if Sqp != Sq:
        o = o[:, :Sq]
    return o


# ----------------------------------------------------------------------------
# Model glue (batch-first (B, S, D) bf16 stream)
# ----------------------------------------------------------------------------
def xla_linear(x, p):
    # Tiny GEMMs (M ~ B, N < 128) stay on XLA to avoid pallas_call launch overhead.
    return jnp.dot(x, p["w"], preferred_element_type=jnp.float32) + p["b"]


def _split_heads(x, n_head):
    B, S, E = x.shape
    dh = E // n_head
    return x.reshape(B, S, n_head, dh).transpose(0, 2, 1, 3).reshape(B * n_head, S, dh)


def _merge_heads(x, B, n_head):
    BH, S, dh = x.shape
    return x.reshape(B, n_head, S, dh).transpose(0, 2, 1, 3).reshape(B, S, n_head * dh)


def _self_attn_add_ln(x, pos2d, pa, ln, n_head):
    """LayerNorm(x + MHA(q=k=x+pos, v=x) @ Wo + bo), fused QKV projection."""
    B, S, E = x.shape
    qkv = pallas_linear(x, pa["wqkv"], pa["bqkv"])                    # (B, S, 3E) bf16
    # (x + pos) W = x W + pos W -- pos term is batch-invariant and tiny.
    pos_qk = jnp.dot(_as_bf16(pos2d), pa["wqk"],
                     preferred_element_type=jnp.float32).astype(jnp.bfloat16)
    q = qkv[..., :E] + pos_qk[None, :, :E]
    k = qkv[..., E:2 * E] + pos_qk[None, :, E:]
    v = qkv[..., 2 * E:]
    o = pallas_attention(_split_heads(q, n_head),
                         _split_heads(k, n_head),
                         _split_heads(v, n_head))
    o = _merge_heads(o, B, n_head)
    return pallas_linear_add_ln(o, pa["wo"], pa["bo"], x, ln)


def _cross_attn_add_ln(tgt, query_pos2d, memory, mem_pos2d, pa, ln, n_head):
    """LayerNorm(tgt + MHA(q=tgt+qpos, k=mem+pos, v=mem) @ Wo + bo), fused KV proj."""
    B, Sq, E = tgt.shape
    q = pallas_linear(tgt, pa["wq"], pa["bq"])
    q_pos = jnp.dot(_as_bf16(query_pos2d), pa["wq"],
                    preferred_element_type=jnp.float32).astype(jnp.bfloat16)
    q = q + q_pos[None]
    kv = pallas_linear(memory, pa["wkv"], pa["bkv"])                  # (B, Sk, 2E) bf16
    k_pos = jnp.dot(_as_bf16(mem_pos2d), pa["wk"],
                    preferred_element_type=jnp.float32).astype(jnp.bfloat16)
    k = kv[..., :E] + k_pos[None]
    v = kv[..., E:]
    o = pallas_attention(_split_heads(q, n_head),
                         _split_heads(k, n_head),
                         _split_heads(v, n_head))
    o = _merge_heads(o, B, n_head)
    return pallas_linear_add_ln(o, pa["wo"], pa["bo"], tgt, ln)


def encoder_layer(src, pos2d, p, n_head):
    # post-norm DETR-style encoder layer (normalize_before=False, dropout = eval)
    src = _self_attn_add_ln(src, pos2d, p["self_attn"], p["norm1"], n_head)
    return pallas_ffn_add_ln(src, p["ffn"], p["norm2"])


def decoder_layer(tgt, memory, mem_pos2d, query_pos2d, p, n_head):
    tgt = _self_attn_add_ln(tgt, query_pos2d, p["self_attn"], p["norm1"], n_head)
    tgt = _cross_attn_add_ln(tgt, query_pos2d, memory, mem_pos2d,
                             p["cross_attn"], p["norm2"], n_head)
    return pallas_ffn_add_ln(tgt, p["ffn"], p["norm3"])


def pos_embed_sine_1d(S, d_model):
    pos = jnp.arange(S, dtype=jnp.float32)[:, None]
    i = jnp.arange(d_model, dtype=jnp.float32)
    div = jnp.power(10000.0, 2.0 * jnp.floor(i / 2.0) / d_model)
    ang = pos / div
    pe = jnp.where((jnp.arange(d_model) % 2) == 0, jnp.sin(ang), jnp.cos(ang))
    return pe                                                        # (S, d_model)


def pos_embed_sine_2d(H, W, d_model):
    num_pos_feats = d_model // 2
    temperature = 10000.0
    scale = 2.0 * math.pi
    eps = 1e-6
    y_embed = jnp.broadcast_to(jnp.arange(1, H + 1, dtype=jnp.float32)[:, None], (H, W))
    x_embed = jnp.broadcast_to(jnp.arange(1, W + 1, dtype=jnp.float32)[None, :], (H, W))
    y_embed = y_embed / (H + eps) * scale
    x_embed = x_embed / (W + eps) * scale
    dim_t = temperature ** (2.0 * (jnp.arange(num_pos_feats) // 2) / num_pos_feats)
    pos_x = x_embed[..., None] / dim_t
    pos_y = y_embed[..., None] / dim_t
    pos_x = jnp.stack([jnp.sin(pos_x[..., 0::2]), jnp.cos(pos_x[..., 1::2])], axis=-1).reshape(H, W, -1)
    pos_y = jnp.stack([jnp.sin(pos_y[..., 0::2]), jnp.cos(pos_y[..., 1::2])], axis=-1).reshape(H, W, -1)
    return jnp.concatenate([pos_y, pos_x], axis=-1)                   # (H, W, d_model)


def backbone_tokens(vis, pp, patch, d_model):
    # vis: (B, num_cams, 3, H, W). Camera loop folded into batch; patchify conv +
    # 1x1 input_proj folded into one matmul (weight folded once in prepare_params).
    B, ncams, C, H, W = vis.shape
    Hp, Wp = H // patch, W // patch
    x = vis.reshape(B * ncams, C, Hp, patch, Wp, patch)
    x = x.transpose(0, 2, 4, 1, 3, 5).reshape(B * ncams * Hp * Wp, C * patch * patch)
    feat = pallas_linear(x, pp["backbone_w"], pp["backbone_b"])       # bf16
    feat = feat.reshape(B, ncams, Hp, Wp, d_model)
    # token order h * (ncams*Wp) + cam*Wp + w  (matches cat-along-width + flatten)
    feat = feat.transpose(0, 2, 1, 3, 4).reshape(B, Hp * ncams * Wp, d_model)
    return feat, (Hp, Wp)


def image_pos_tokens(Hp, Wp, ncams, d_model):
    pos_hw = pos_embed_sine_2d(Hp, Wp, d_model)
    pos = jnp.broadcast_to(pos_hw[:, None], (Hp, ncams, Wp, d_model))
    return pos.reshape(Hp * ncams * Wp, d_model)                      # (S_img, d)


# ----------------------------------------------------------------------------
# Full forward pass
# ----------------------------------------------------------------------------
def act_forward(pp, obs, cfg, actions=None, rng=None):
    state = obs["state"]                           # (B, d_prop)
    bs = state.shape[0]
    d = cfg["d_model"]
    dz = cfg["d_z_distribution"]
    nh = cfg["n_head"]

    is_training = actions is not None
    if is_training:
        # -------- VAE representation encoder --------
        cls = jnp.broadcast_to(pp["cls_embed"][None], (bs, 1, d))
        state_embed = xla_linear(state, pp["proprio_proj"])[:, None, :]
        action_embed = xla_linear(actions, pp["action_proj"])
        enc_in = jnp.concatenate([cls, state_embed, action_embed], axis=1)
        S = enc_in.shape[1]
        pos1d = pos_embed_sine_1d(S, d)
        h = _as_bf16(enc_in)
        for lp in pp["representation_encoder"]:
            h = encoder_layer(h, pos1d, lp, nh)
        encoder_output = h[:, 0].astype(jnp.float32)
        latent_info = xla_linear(encoder_output, pp["latent_proj"])
        mu = latent_info[:, :dz]
        logvar = latent_info[:, dz:]
        std = jnp.exp(logvar / 2.0)
        eps = jax.random.normal(rng, std.shape, dtype=std.dtype)
        z = mu + std * eps
        latent_input = xla_linear(z, pp["latent_out_proj"])
    else:
        mu = logvar = None
        latent_sample = jnp.zeros((bs, dz), jnp.float32)
        latent_input = xla_linear(latent_sample, pp["latent_out_proj"])

    # -------- vision backbone (folded, all cameras in one matmul) --------
    vis = obs["rgb"]                               # (B, num_cams, 3, H, W)
    ncams = vis.shape[1]
    img_tokens, (Hp, Wp) = backbone_tokens(vis, pp, cfg["patch"], d)   # (B, S_img, d) bf16
    img_pos2d = image_pos_tokens(Hp, Wp, ncams, d)                     # (S_img, d)

    proprio_input = xla_linear(state, pp["input_proprio_proj"])
    addition = jnp.stack([latent_input, proprio_input], axis=1)        # (B, 2, d)
    src = jnp.concatenate([_as_bf16(addition), img_tokens], axis=1)    # (B, 2+S_img, d)

    pos2d = jnp.concatenate([pp["additional_pos_embed"], img_pos2d], axis=0)
    query_pos2d = pp["query_embed"]                                    # (chunk, d)
    tgt = jnp.zeros((bs, cfg["chunk_size"], d), jnp.bfloat16)

    for lp in pp["ACT_encoder"]:
        src = encoder_layer(src, pos2d, lp, nh)
    memory = src
    for lp in pp["ACT_decoder"]:
        tgt = decoder_layer(tgt, memory, pos2d, query_pos2d, lp, nh)

    a_hat = xla_linear(tgt.astype(jnp.float32), pp["action_head"])     # (B, chunk, d_a)
    return a_hat, (mu, logvar)


# ----------------------------------------------------------------------------
# Parameter init (PyTorch-like layout) + one-time inference prep (fusion / bf16)
# ----------------------------------------------------------------------------
def init_linear(key, din, dout, scale=0.02):
    kw, kb = jax.random.split(key)
    return {"w": jax.random.normal(kw, (din, dout), jnp.float32) * scale,
            "b": jax.random.normal(kb, (dout,), jnp.float32) * scale}


def init_ln(d):
    return {"g": jnp.ones((d,), jnp.float32), "b": jnp.zeros((d,), jnp.float32)}


def init_mha(key, d):
    ks = jax.random.split(key, 4)
    return {"q": init_linear(ks[0], d, d), "k": init_linear(ks[1], d, d),
            "v": init_linear(ks[2], d, d), "o": init_linear(ks[3], d, d)}


def init_encoder_layer(key, d, dff):
    ks = jax.random.split(key, 3)
    return {"self_attn": init_mha(ks[0], d),
            "lin1": init_linear(ks[1], d, dff), "lin2": init_linear(ks[2], dff, d),
            "norm1": init_ln(d), "norm2": init_ln(d)}


def init_decoder_layer(key, d, dff):
    ks = jax.random.split(key, 4)
    return {"self_attn": init_mha(ks[0], d), "cross_attn": init_mha(ks[1], d),
            "lin1": init_linear(ks[2], d, dff), "lin2": init_linear(ks[3], dff, d),
            "norm1": init_ln(d), "norm2": init_ln(d), "norm3": init_ln(d)}


def init_params(key, cfg):
    d = cfg["d_model"]
    ks = iter(jax.random.split(key, 32))
    return {
        "cls_embed": jax.random.normal(next(ks), (1, d), jnp.float32) * 0.02,
        "proprio_proj": init_linear(next(ks), cfg["d_proprioception"], d),
        "action_proj": init_linear(next(ks), cfg["d_action"], d),
        "latent_proj": init_linear(next(ks), d, 2 * cfg["d_z_distribution"]),
        "representation_encoder": [init_encoder_layer(next(ks), d, cfg["d_feedforward"])
                                   for _ in range(cfg["n_representation_encoder_layers"])],
        "latent_out_proj": init_linear(next(ks), cfg["d_z_distribution"], d),
        "input_proprio_proj": init_linear(next(ks), cfg["d_proprioception"], d),
        "query_embed": jax.random.normal(next(ks), (cfg["chunk_size"], d), jnp.float32) * 0.02,
        "additional_pos_embed": jax.random.normal(next(ks), (2, d), jnp.float32) * 0.02,
        "ACT_encoder": [init_encoder_layer(next(ks), d, cfg["d_feedforward"])
                        for _ in range(cfg["n_encoder_layers"])],
        "ACT_decoder": [init_decoder_layer(next(ks), d, cfg["d_feedforward"])
                        for _ in range(cfg["n_decoder_layers"])],
        "backbone": init_linear(next(ks), 3 * cfg["patch"] * cfg["patch"],
                                cfg["backbone_channels"]),
        "input_proj": init_linear(next(ks), cfg["backbone_channels"], d),
        "action_head": init_linear(next(ks), d, cfg["d_action"]),
    }


def prepare_params(params):
    """One-time prep: concat QKV/KV weights, fold backbone+input_proj, cast to bf16."""
    def prep_self_mha(p):
        wqkv = jnp.concatenate([p["q"]["w"], p["k"]["w"], p["v"]["w"]], axis=1)
        bqkv = jnp.concatenate([p["q"]["b"], p["k"]["b"], p["v"]["b"]], axis=0)
        wqk = jnp.concatenate([p["q"]["w"], p["k"]["w"]], axis=1)
        return {"wqkv": wqkv.astype(jnp.bfloat16), "bqkv": bqkv.astype(jnp.float32),
                "wqk": wqk.astype(jnp.bfloat16),
                "wo": p["o"]["w"].astype(jnp.bfloat16),
                "bo": p["o"]["b"].astype(jnp.float32)}

    def prep_cross_mha(p):
        wkv = jnp.concatenate([p["k"]["w"], p["v"]["w"]], axis=1)
        bkv = jnp.concatenate([p["k"]["b"], p["v"]["b"]], axis=0)
        return {"wq": p["q"]["w"].astype(jnp.bfloat16),
                "bq": p["q"]["b"].astype(jnp.float32),
                "wk": p["k"]["w"].astype(jnp.bfloat16),
                "wkv": wkv.astype(jnp.bfloat16), "bkv": bkv.astype(jnp.float32),
                "wo": p["o"]["w"].astype(jnp.bfloat16),
                "bo": p["o"]["b"].astype(jnp.float32)}

    def prep_ffn(p1, p2):
        return {"w1": p1["w"].astype(jnp.bfloat16), "b1": p1["b"].astype(jnp.float32),
                "w2": p2["w"].astype(jnp.bfloat16), "b2": p2["b"].astype(jnp.float32)}

    def prep_enc(p):
        return {"self_attn": prep_self_mha(p["self_attn"]),
                "ffn": prep_ffn(p["lin1"], p["lin2"]),
                "norm1": p["norm1"], "norm2": p["norm2"]}

    def prep_dec(p):
        return {"self_attn": prep_self_mha(p["self_attn"]),
                "cross_attn": prep_cross_mha(p["cross_attn"]),
                "ffn": prep_ffn(p["lin1"], p["lin2"]),
                "norm1": p["norm1"], "norm2": p["norm2"], "norm3": p["norm3"]}

    bb_w = params["backbone"]["w"] @ params["input_proj"]["w"]
    bb_b = params["backbone"]["b"] @ params["input_proj"]["w"] + params["input_proj"]["b"]

    return {
        "cls_embed": params["cls_embed"],
        "proprio_proj": params["proprio_proj"],
        "action_proj": params["action_proj"],
        "latent_proj": params["latent_proj"],
        "latent_out_proj": params["latent_out_proj"],
        "input_proprio_proj": params["input_proprio_proj"],
        "query_embed": params["query_embed"],
        "additional_pos_embed": params["additional_pos_embed"],
        "action_head": params["action_head"],
        "representation_encoder": [prep_enc(p) for p in params["representation_encoder"]],
        "ACT_encoder": [prep_enc(p) for p in params["ACT_encoder"]],
        "ACT_decoder": [prep_dec(p) for p in params["ACT_decoder"]],
        "backbone_w": bb_w.astype(jnp.bfloat16),
        "backbone_b": bb_b.astype(jnp.float32),
    }


# ----------------------------------------------------------------------------
# Demo
# ----------------------------------------------------------------------------
if __name__ == "__main__":
    cfg = dict(d_model=32, d_proprioception=8, d_action=8, d_z_distribution=16,
               d_feedforward=64, n_head=4, n_representation_encoder_layers=2,
               n_encoder_layers=2, n_decoder_layers=2, chunk_size=8,
               backbone_channels=16, patch=8)

    key = jax.random.PRNGKey(0)
    k_param, k_rgb, k_state, k_act, k_eps = jax.random.split(key, 5)

    params = init_params(k_param, cfg)
    pp = prepare_params(params)

    bs, num_cams, H, W = 2, 2, 16, 16
    obs = {
        "rgb": jax.random.normal(k_rgb, (bs, num_cams, 3, H, W), jnp.float32),
        "state": jax.random.normal(k_state, (bs, cfg["d_proprioception"]), jnp.float32),
    }
    actions = jax.random.normal(k_act, (bs, cfg["chunk_size"], cfg["d_action"]), jnp.float32)

    # inference path (actions=None): deterministic
    a_hat_inf, (mu_i, lv_i) = act_forward(pp, obs, cfg, actions=None)
    a_hat_inf = jax.block_until_ready(a_hat_inf)
    assert a_hat_inf.shape == (bs, cfg["chunk_size"], cfg["d_action"])

    # training path (actions given): exercises the VAE representation encoder
    a_hat_tr, (mu, logvar) = act_forward(pp, obs, cfg, actions=actions, rng=k_eps)
    a_hat_tr = jax.block_until_ready(a_hat_tr)
    mu = jax.block_until_ready(mu)
    logvar = jax.block_until_ready(logvar)
    assert a_hat_tr.shape == (bs, cfg["chunk_size"], cfg["d_action"])
    assert mu.shape == (bs, cfg["d_z_distribution"])
    assert logvar.shape == (bs, cfg["d_z_distribution"])
    assert jnp.all(jnp.isfinite(a_hat_tr)) and jnp.all(jnp.isfinite(a_hat_inf))

    print("KERNEL_OK")
</pallas_src>

<mosaic_0001>
module attributes {stable_mosaic.version = 11 : i64} {
  func.func @_matmul_kernel(%arg0: i32, %arg1: i32, %arg2: i32, %arg3: memref<16x192xbf16, #tpu.memory_space<vmem>>, %arg4: memref<192x32xbf16, #tpu.memory_space<vmem>>, %arg5: memref<1x32xf32, #tpu.memory_space<vmem>>, %arg6: memref<16x32xbf16, #tpu.memory_space<vmem>>, %arg7: memref<16x32xf32, #tpu.memory_space<vmem>>) attributes {dimension_semantics = [#tpu.dimension_semantics<parallel>, #tpu.dimension_semantics<parallel>, #tpu.dimension_semantics<arbitrary>], iteration_bounds = array<i64: 1, 1, 1>, scalar_prefetch = 0 : i64, scratch_operands = 1 : i64, tpu.core_type = #tpu.core_type<tc>, window_params = [{transform_indices = @transform_0, window_bounds = array<i64: 16, 192>}, {transform_indices = @transform_1, window_bounds = array<i64: 192, 32>}, {transform_indices = @transform_2, window_bounds = array<i64: 1, 32>}, {transform_indices = @transform_3, window_bounds = array<i64: 16, 32>}]} {
    %c0_i32 = arith.constant 0 : i32
    %0 = arith.cmpi eq, %arg2, %c0_i32 : i32
    %1 = arith.extui %0 : i1 to i32
    %c0_i32_0 = arith.constant 0 : i32
    %2 = arith.cmpi ne, %1, %c0_i32_0 : i32
    scf.if %2 {
      %cst_10 = arith.constant 0.000000e+00 : f32
      %12 = vector.broadcast %cst_10 : f32 to vector<16x32xf32>
      %c0_11 = arith.constant 0 : index
      %c0_12 = arith.constant 0 : index
      %13 = vector.load %arg7[%c0_11, %c0_12] : memref<16x32xf32, #tpu.memory_space<vmem>>, vector<16x32xf32>
      tpu.vector_store %arg7[%c0_11, %c0_12], %12 {strides = array<i32>} : memref<16x32xf32, #tpu.memory_space<vmem>>, vector<16x32xf32>,
    } else {
    }
    %c0 = arith.constant 0 : index
    %c0_1 = arith.constant 0 : index
    %3 = vector.load %arg7[%c0, %c0_1] : memref<16x32xf32, #tpu.memory_space<vmem>>, vector<16x32xf32>
    %c0_2 = arith.constant 0 : index
    %c0_3 = arith.constant 0 : index
    %4 = vector.load %arg3[%c0_2, %c0_3] : memref<16x192xbf16, #tpu.memory_space<vmem>>, vector<16x192xbf16>
    %c0_4 = arith.constant 0 : index
    %c0_5 = arith.constant 0 : index
    %5 = vector.load %arg4[%c0_4, %c0_5] : memref<192x32xbf16, #tpu.memory_space<vmem>>, vector<192x32xbf16>
    %cst = arith.constant dense<0.000000e+00> : vector<16x32xf32>
    %6 = tpu.matmul %4, %5, %cst {dimension_numbers = #tpu.dot_dimension_numbers<[1], [0], [0], [1], [0, 0, 1, 1], [], []>} : vector<16x192xbf16>, vector<192x32xbf16>, vector<16x32xf32> -> vector<16x32xf32>
    %7 = arith.addf %3, %6 : vector<16x32xf32>
    %c0_6 = arith.constant 0 : index
    %c0_7 = arith.constant 0 : index
    %8 = vector.load %arg7[%c0_6, %c0_7] : memref<16x32xf32, #tpu.memory_space<vmem>>, vector<16x32xf32>
    tpu.vector_store %arg7[%c0_6, %c0_7], %7 {strides = array<i32>} : memref<16x32xf32, #tpu.memory_space<vmem>>, vector<16x32xf32>,
    %c0_i32_8 = arith.constant 0 : i32
    %9 = arith.cmpi eq, %arg2, %c0_i32_8 : i32
    %10 = arith.extui %9 : i1 to i32
    %c0_i32_9 = arith.constant 0 : i32
    %11 = arith.cmpi ne, %10, %c0_i32_9 : i32
    scf.if %11 {
      %c0_10 = arith.constant 0 : index
      %c0_11 = arith.constant 0 : index
      %12 = vector.load %arg7[%c0_10, %c0_11] : memref<16x32xf32, #tpu.memory_space<vmem>>, vector<16x32xf32>
      %c0_12 = arith.constant 0 : index
      %c0_13 = arith.constant 0 : index
      %13 = vector.load %arg5[%c0_12, %c0_13] : memref<1x32xf32, #tpu.memory_space<vmem>>, vector<1x32xf32>
      %14 = vector.broadcast %13 : vector<1x32xf32> to vector<16x32xf32>
      %15 = arith.addf %12, %14 : vector<16x32xf32>
      %16 = arith.truncf %15 : vector<16x32xf32> to vector<16x32xbf16>
      %c0_14 = arith.constant 0 : index
      %c0_15 = arith.constant 0 : index
      %17 = vector.load %arg6[%c0_14, %c0_15] : memref<16x32xbf16, #tpu.memory_space<vmem>>, vector<16x32xbf16>
      tpu.vector_store %arg6[%c0_14, %c0_15], %16 {strides = array<i32>} : memref<16x32xbf16, #tpu.memory_space<vmem>>, vector<16x32xbf16>,
    } else {
    }
    return
  }
  func.func @transform_0(%arg0: i32, %arg1: i32, %arg2: i32) -> (i32, i32) {
    %c0_i32 = arith.constant 0 : i32
    return %arg0, %arg2 : i32, i32
  }
  func.func @transform_1(%arg0: i32, %arg1: i32, %arg2: i32) -> (i32, i32) {
    %c0_i32 = arith.constant 0 : i32
    return %arg2, %arg1 : i32, i32
  }
  func.func @transform_2(%arg0: i32, %arg1: i32, %arg2: i32) -> (i32, i32) {
    %c0_i32 = arith.constant 0 : i32
    %c0_i32_0 = arith.constant 0 : i32
    return %c0_i32, %arg1 : i32, i32
  }
  func.func @transform_3(%arg0: i32, %arg1: i32, %arg2: i32) -> (i32, i32) {
    %c0_i32 = arith.constant 0 : i32
    return %arg0, %arg1 : i32, i32
  }
}

</mosaic_0001>

<bundles_post_ra>
// kernel: tpu_custom_call.1
= control target key start
LH: loop header
LB: loop body
LE: loop exit
PB: predicated region body
PF: predicated region fallthrough
CT: control target
= control target key end

     0   :  { %v287_v1 = vmov 0   ;;  %vm20_vm0 = vcmask 261120   ;;  %v288_v3 = vmov 0.0   ;;  %vm132_vm1 = vcmask 523264   ;;  %s373_s0 = inlined_call_operand.vmem [shape: bf16[16,192], index: 0, kind: input, shape index: {}]   ;;  %s374_s1 = inlined_call_operand.vmem [shape: bf16[192,32], index: 1, kind: input, shape index: {}]   ;;  %s375_s2 = inlined_call_operand.vmem [shape: f32[1,32], index: 2, kind: input, shape index: {}]   ;;  %s376_s3 = inlined_call_operand.hbm [shape: bf16[16,32], index: 3, kind: output, shape index: {}]  }
   0x1   :  { %v248_v0 = vld [vmem:[%s374_s1] sm:$0xff]   ;;  %136 = vmatprep.subr.bf16.mxu0 %v287_v1  ;;  %v249_v2 = vld [vmem:[%s374_s1 + $0x8] sm:$0xff]   ;;  %21 = vst.msk [vmem:[#allocation2] sm:$0xff] %vm20_vm0, %v288_v3  ;;  %22 = vst.msk [vmem:[#allocation2 + $0x8] sm:$0xff] %vm20_vm0, %v288_v3 }
   0x2   :  { %137 = vmatpush1.bf16.msra.mxu0 %v248_v0  ;;  %v250_v4 = vld [vmem:[%s374_s1 + $0x10] sm:$0xff]   ;;  %v251_v5 = vld [vmem:[%s374_s1 + $0x18] sm:$0xff]   ;;  %v262_v6 = vld [vmem:[%s373_s0 + $0x4] ss:$8 sps:$4 sm:$0xff]  }
   0x3   :  { %138 = vmatprep.subr.bf16.mxu0 %v287_v1 }
   0x6   :  { %139 = vmatpush1.bf16.msra.mxu0 %v249_v2 }
   0x7   :  { %140 = vmatprep.subr.bf16.mxu0 %v287_v1 }
   0xa   :  { %141 = vmatpush1.bf16.msra.mxu0 %v250_v4 }
   0xb   :  { %142 = vmatprep.subr.bf16.mxu0 %v287_v1 }
   0xc   :  { %8 = vsyncpa [#allocation4], 0  ;;  %v252_v7 = vld [vmem:[%s374_s1 + $0x20] sm:$0xff]   ;;  %237 = vmatprep.mubr.msk.bf16.mxu0 %vm132_vm1, %v262_v6  ;;  %v253_v8 = vld [vmem:[%s374_s1 + $0x28] sm:$0xff]   ;;  %vm204_vm2 = vcmask 257024  }
   0xd   :  { %v254_v9 = vld [vmem:[%s374_s1 + $0x30] sm:$0xff]   ;;  %v255_v10 = vld [vmem:[%s374_s1 + $0x38] sm:$0xff]   ;;  %v256_v11 = vld [vmem:[%s374_s1 + $0x40] sm:$0xff]  }
   0xe   :  { %143 = vmatpush1.bf16.msra.mxu0 %v251_v5  ;;  %v257_v12 = vld [vmem:[%s374_s1 + $0x48] sm:$0xff]   ;;  %v258_v13 = vld [vmem:[%s374_s1 + $0x50] sm:$0xff]   ;;  %v259_v14 = vld [vmem:[%s374_s1 + $0x58] sm:$0xff]  }
   0xf   :  { %144 = vmatprep.subr.bf16.mxu0 %v287_v1  ;;  %v260_v15 = vld [vmem:[%s373_s0] ss:$8 sps:$4 sm:$0xff]   ;;  %s289_s0 = smov [#allocation3]  }
  0x10   :  { %v23_v16 = vld [vmem:[#allocation2] sm:$0xff]  ;;  %v24_v18 = vld [vmem:[#allocation2 + $0x8] sm:$0xff]  ;;  %s212_s14 = sshll.u32 %s289_s0, 4  ;;  %s213_s14 = int_to_ptr.vmem [resolvable:$true] %s212_s14 }
  0x11   :  { %v238_v24 = vld [vmem:[%s375_s2] ss:$0 sm:$0xff]  ;;  %s263_s15 = scalar_lea.vmem %s213_s14, 128  ;;  %p268_p1 = scmp.lt.s32.totalorder %s213_s14, %s213_s14 }
  0x12   :  { %145 = vmatpush1.bf16.msra.mxu0 %v252_v7  ;;  %p264_p0 = scmp.ne.s32.totalorder %s213_s14, %s263_s15  ;;  %p269_p2 = scmp.lt.s32.totalorder %s263_s15, %s263_s15 }
  0x13   :  { %146 = vmatprep.subr.bf16.mxu0 %v287_v1 }
  0x14   :  { %p270_p3 = por %p269_p2, %p268_p1 }
  0x16   :  { %147 = vmatpush1.bf16.msra.mxu0 %v253_v8  ;;  %p271_p4 = pnand %p270_p3, %p264_p0 }
  0x17   :  { %148 = vmatprep.subr.bf16.mxu0 %v287_v1 }
  0x1a   :  { %149 = vmatpush1.bf16.msra.mxu0 %v254_v9 }
  0x1b   :  { %150 = vmatprep.subr.bf16.mxu0 %v287_v1 }
  0x1e   :  { %151 = vmatpush1.bf16.msra.mxu0 %v255_v10 }
  0x1f   :  { %152 = vmatprep.subr.bf16.mxu0 %v287_v1 }
  0x22   :  { %153 = vmatpush1.bf16.msra.mxu0 %v256_v11 }
  0x23   :  { %154 = vmatprep.subr.bf16.mxu0 %v287_v1 }
  0x26   :  { %155 = vmatpush1.bf16.msra.mxu0 %v257_v12 }
  0x27   :  { %156 = vmatprep.subr.bf16.mxu0 %v287_v1 }
  0x2a   :  { %157 = vmatpush1.bf16.msra.mxu0 %v258_v13 }
  0x2b   :  { %158 = vmatprep.subr.bf16.mxu0 %v287_v1 }
  0x2e   :  { %159 = vmatpush1.bf16.msra.mxu0 %v259_v14 }
  0x31   :  { %169 = vmatmul.mubr.bf16.vlgmr.msra.gmra.mrb[0].mxu0 %v260_v15 }
 0x104   :  { %v170_v17 = vpop.f32.mrb[0].mxu0 }
 0x105   :  { %v177_v19 = vadd.f32 %v170_v17, %v23_v16  ;;  %v172_v20 = vpop.f32.mrb[1].mxu0 }
 0x106   :  { %v173_v21 = vpop.f32.mrb[2].mxu0 }
 0x107   :  { %180 = vst.msk [vmem:[#allocation2] sm:$0xff] %vm20_vm0, %v177_v19  ;;  %v178_v22 = vadd.f32 %v173_v21, %v24_v18  ;;  %v175_v23 = vpop.f32.mrb[3].mxu0 }
 0x109   :  { %181 = vst.msk [vmem:[#allocation2 + $0x8] sm:$0xff] %vm20_vm0, %v178_v22 }
 0x10e   :  { %v185_v25 = vld [vmem:[#allocation2] sm:$0xff] }
 0x10f   :  { %v194_v26 = vadd.f32 %v238_v24, %v185_v25 }
 0x110   :  { %v186_v27 = vld [vmem:[#allocation2 + $0x8] sm:$0xff] }
 0x111   :  { %v195_v28 = vadd.f32 %v238_v24, %v186_v27  ;;  %v241_v29 = vpack.c.bf16 %v194_v26, %v194_v26 }
 0x113   :  { %v242_v30 = vpack.c.bf16 %v195_v28, %v195_v28  ;;  %205 = vst.msk [vmem:[#allocation3] sm:$0xf] %vm204_vm2, %v241_v29 }
 0x115   :  { %206 = vst.msk [vmem:[#allocation3 + $0x4] sm:$0xf] %vm204_vm2, %v242_v30 }
 0x116   :  { %274 = shalt.err (!%p271_p4)
}
 0x117   :  { %s275_s17 = scalar_lea.hbm %s376_s3, 128 }
 0x118   :  { %p276_p5 = scmp.ne.s32.totalorder %s376_s3, %s275_s17  ;;  %p279_p6 = scmp.lt.u32.totalorder %s275_s17, %s376_s3 }
 0x11a   :  { %p281_p7 = pnand %p279_p6, %p276_p5 }
 0x11c   :  { %284 = shalt.err (!%p281_p7)
}
 0x11d   :  { %s290_s22 = smov 64   ;;  %s291_s23 = smov 4  }
 0x11e   :  { %218 = dma.vmem_to_hbm [thread:$0]  %s213_s14, 128, %s376_s3, [#allocation4], %s290_s22, %s290_s22, %s291_s23  }
 0x11f   :  { %285 = dma.done.wait [#allocation4], 128  }
 0x120   :  { %286 = vsyncadd [#allocation4], 4294967168 }
 0x121   :  { %222 = vsyncpa [#allocation4], 1 }

</bundles_post_ra>
